<compile_context>
chip_gen: v6e
topology: v6e:2x2x1
jax: 0.10.0
libtpu: 0.0.40
codegen_flags: <defaults>
</compile_context>

<pallas_src>
import functools

import jax
import jax.numpy as jnp
from jax.experimental import pallas as pl
from jax.experimental.pallas import tpu as pltpu


LANE = 128


def _round_up(n, m):
    return ((n + m - 1) // m) * m


def deepnn_kernel(x_ref, w1_ref, b1_ref, wh_ref, bh_ref, out_ref, *, out_dim):
    """One batch tile: x [TB, IN_PAD](bf16) -> softmax(relu-chain) [TB, H_PAD](f32)."""
    # input_layer + relu: bf16 operands, f32 accumulation (padded cols/rows add 0).
    h = jnp.dot(x_ref[...], w1_ref[...], preferred_element_type=jnp.float32)
    h = jnp.maximum(h + b1_ref[...], 0.0)

    # hlayer1..hlayer4 + output_layer, each followed by relu (as in the spec).
    for i in range(wh_ref.shape[0]):  # static Python loop over the stacked layers
        y = jnp.dot(h.astype(jnp.bfloat16), wh_ref[i],
                    preferred_element_type=jnp.float32)
        h = jnp.maximum(y + bh_ref[i], 0.0)

    # Softmax over the real `out_dim` classes only: padded lanes -> -1e30 so
    # exp() of them is 0 and the denominator is not corrupted. (Safe because the
    # post-ReLU logits are >= 0, so the row max is >= 0.)
    lane_idx = jax.lax.broadcasted_iota(jnp.int32, h.shape, dimension=1)
    logits = jnp.where(lane_idx < out_dim, h, -1e30)
    m = jnp.max(logits, axis=-1, keepdims=True)
    e = jnp.exp(logits - m)
    denom = jnp.sum(e, axis=-1, keepdims=True)
    out_ref[...] = e / denom  # exact divide: rows sum to 1 within f32 eps


def build_deepnn_forward(params):
    """params: list of (W [in,out], b [out]) f32 for the 6 layers (W already
    transposed vs PyTorch's [out,in]). Returns a jitted forward(x)."""
    input_dim = params[0][0].shape[0]
    dims = [input_dim] + [w.shape[1] for w, _ in params]
    out_dim = dims[-1]

    in_pad = _round_up(input_dim, LANE)
    h_pad = _round_up(max(dims[1:]), LANE)

    # --- one-time lane-dense padding / stacking (hoisted out of the call path).
    # Weights go to bf16 for the bf16-native MXU; biases stay f32.
    w1, b1 = params[0]
    w1_p = jnp.pad(w1, ((0, in_pad - w1.shape[0]),
                        (0, h_pad - w1.shape[1]))).astype(jnp.bfloat16)
    b1_p = jnp.pad(b1, (0, h_pad - b1.shape[0])).reshape(1, h_pad).astype(jnp.float32)

    wh = jnp.stack([jnp.pad(w, ((0, h_pad - w.shape[0]), (0, h_pad - w.shape[1])))
                    for w, _ in params[1:]]).astype(jnp.bfloat16)
    bh = jnp.stack([jnp.pad(b, (0, h_pad - b.shape[0])).reshape(1, h_pad)
                    for _, b in params[1:]]).astype(jnp.float32)
    n_stack = wh.shape[0]

    flops_per_row = 2 * sum(dims[i] * dims[i + 1] for i in range(len(dims) - 1))
    kernel = functools.partial(deepnn_kernel, out_dim=out_dim)

    @jax.jit
    def forward(x):
        B = x.shape[0]
        # Batch tile: small B -> single 8-aligned tile (overhead-bound regime);
        # large B -> big tiles (~512 rows, near HBM roofline) with >= 2 grid
        # steps so the "parallel" axis shards across v7x's 2 TensorCores.
        if B <= LANE:
            tb = _round_up(B, 8)
        elif B <= 2 * LANE:
            tb = LANE
        else:
            tb = min(512, _round_up(B // 2, LANE))
        b_pad = _round_up(B, tb)

        x_p = jnp.pad(x.astype(jnp.bfloat16),
                      ((0, b_pad - B), (0, in_pad - input_dim)))

        cost = pl.CostEstimate(
            flops=B * flops_per_row,
            transcendentals=b_pad * h_pad,  # exp in the softmax
            bytes_accessed=2 * (x_p.size + w1_p.size + wh.size)
                           + 4 * (b1_p.size + bh.size + b_pad * h_pad))

        out_p = pl.pallas_call(
            kernel,
            out_shape=jax.ShapeDtypeStruct((b_pad, h_pad), jnp.float32),
            grid=(b_pad // tb,),
            in_specs=[
                pl.BlockSpec((tb, in_pad), lambda i: (i, 0)),                # x: streamed
                pl.BlockSpec((in_pad, h_pad), lambda i: (0, 0)),             # W1: resident
                pl.BlockSpec((1, h_pad), lambda i: (0, 0)),                  # b1: resident
                pl.BlockSpec((n_stack, h_pad, h_pad), lambda i: (0, 0, 0)),  # W stack: resident
                pl.BlockSpec((n_stack, 1, h_pad), lambda i: (0, 0, 0)),      # b stack: resident
            ],
            out_specs=pl.BlockSpec((tb, h_pad), lambda i: (i, 0)),           # lane-dense out
            compiler_params=pltpu.CompilerParams(
                dimension_semantics=("parallel",)),
            cost_estimate=cost,
        )(x_p, w1_p, b1_p, wh, bh)

        return out_p[:B, :out_dim]

    return forward


def init_params(key, dims):
    """Deterministic init. dims = [input_dim, nh1..nh5, output_dim].
    Returns list of (W [in,out], b [out]) — W already transposed vs PyTorch."""
    params = []
    for i in range(len(dims) - 1):
        fan_in, fan_out = dims[i], dims[i + 1]
        key, kw, kb = jax.random.split(key, 3)
        bound = 1.0 / jnp.sqrt(fan_in)
        w = jax.random.uniform(kw, (fan_in, fan_out), jnp.float32, -bound, bound)
        b = jax.random.uniform(kb, (fan_out,), jnp.float32, -bound, bound)
        params.append((w, b))
    return params


def deepnn_reference(x, params):
    """Pure-JAX f32 reference: relu after every layer (incl. output), then softmax."""
    h = x
    for w, b in params:
        h = jnp.maximum(h @ w + b, 0.0)
    return jax.nn.softmax(h, axis=1)


if __name__ == "__main__":
    # Small MNIST-like MLP: input_dim=64, hidden=32 each, 10 classes, batch=8.
    dims = [64, 32, 32, 32, 32, 32, 10]
    key = jax.random.PRNGKey(0)
    key, kx = jax.random.split(key)
    x = jax.random.normal(kx, (8, dims[0]), jnp.float32)
    params = init_params(key, dims)

    forward = build_deepnn_forward(params)
    out = jax.block_until_ready(forward(x))

    ref = deepnn_reference(x, params)
    assert out.shape == (8, 10)
    # Exact divide -> rows sum to 1 within f32 eps.
    assert jnp.allclose(jnp.sum(out, axis=1), 1.0, atol=1e-4), "softmax rows must sum to 1"
    # bf16 matmul operands vs f32 reference -> loose-but-meaningful tolerance.
    assert jnp.allclose(out, ref, atol=1e-2, rtol=5e-2), "mismatch vs f32 reference"

    print("KERNEL_OK")
</pallas_src>

<mosaic_0001>
module attributes {stable_mosaic.version = 11 : i64} {
  func.func @deepnn_kernel(%arg0: i32, %arg1: memref<8x128xbf16, #tpu.memory_space<vmem>>, %arg2: memref<128x128xbf16, #tpu.memory_space<vmem>>, %arg3: memref<1x128xf32, #tpu.memory_space<vmem>>, %arg4: memref<5x128x128xbf16, #tpu.memory_space<vmem>>, %arg5: memref<5x1x128xf32, #tpu.memory_space<vmem>>, %arg6: memref<8x128xf32, #tpu.memory_space<vmem>>) attributes {dimension_semantics = [#tpu.dimension_semantics<parallel>], iteration_bounds = array<i64: 1>, scalar_prefetch = 0 : i64, scratch_operands = 0 : i64, tpu.core_type = #tpu.core_type<tc>, window_params = [{transform_indices = @transform_0, window_bounds = array<i64: 8, 128>}, {pipeline_mode = #tpu.pipeline_mode<synchronous>, transform_indices = @transform_1, window_bounds = array<i64: 128, 128>}, {pipeline_mode = #tpu.pipeline_mode<synchronous>, transform_indices = @transform_2, window_bounds = array<i64: 1, 128>}, {pipeline_mode = #tpu.pipeline_mode<synchronous>, transform_indices = @transform_3, window_bounds = array<i64: 5, 128, 128>}, {pipeline_mode = #tpu.pipeline_mode<synchronous>, transform_indices = @transform_4, window_bounds = array<i64: 5, 1, 128>}, {transform_indices = @transform_5, window_bounds = array<i64: 8, 128>}]} {
    %c0 = arith.constant 0 : index
    %c0_0 = arith.constant 0 : index
    %0 = vector.load %arg1[%c0, %c0_0] : memref<8x128xbf16, #tpu.memory_space<vmem>>, vector<8x128xbf16>
    %c0_1 = arith.constant 0 : index
    %c0_2 = arith.constant 0 : index
    %1 = vector.load %arg2[%c0_1, %c0_2] : memref<128x128xbf16, #tpu.memory_space<vmem>>, vector<128x128xbf16>
    %cst = arith.constant dense<0.000000e+00> : vector<8x128xf32>
    %2 = tpu.matmul %0, %1, %cst {dimension_numbers = #tpu.dot_dimension_numbers<[1], [0], [0], [1], [0, 0, 1, 1], [], []>} : vector<8x128xbf16>, vector<128x128xbf16>, vector<8x128xf32> -> vector<8x128xf32>
    %c0_3 = arith.constant 0 : index
    %c0_4 = arith.constant 0 : index
    %3 = vector.load %arg3[%c0_3, %c0_4] : memref<1x128xf32, #tpu.memory_space<vmem>>, vector<1x128xf32>
    %4 = vector.broadcast %3 : vector<1x128xf32> to vector<8x128xf32>
    %5 = arith.addf %2, %4 : vector<8x128xf32>
    %cst_5 = arith.constant 0.000000e+00 : f32
    %6 = vector.broadcast %cst_5 : f32 to vector<8x128xf32>
    %7 = arith.maximumf %5, %6 : vector<8x128xf32>
    %8 = arith.truncf %7 : vector<8x128xf32> to vector<8x128xbf16>
    %c0_6 = arith.constant 0 : index
    %c0_7 = arith.constant 0 : index
    %c0_8 = arith.constant 0 : index
    %9 = vector.load %arg4[%c0_6, %c0_7, %c0_8] : memref<5x128x128xbf16, #tpu.memory_space<vmem>>, vector<1x128x128xbf16>
    %10 = vector.shape_cast %9 : vector<1x128x128xbf16> to vector<128x128xbf16>
    %cst_9 = arith.constant dense<0.000000e+00> : vector<8x128xf32>
    %11 = tpu.matmul %8, %10, %cst_9 {dimension_numbers = #tpu.dot_dimension_numbers<[1], [0], [0], [1], [0, 0, 1, 1], [], []>} : vector<8x128xbf16>, vector<128x128xbf16>, vector<8x128xf32> -> vector<8x128xf32>
    %c0_10 = arith.constant 0 : index
    %c0_11 = arith.constant 0 : index
    %c0_12 = arith.constant 0 : index
    %12 = vector.load %arg5[%c0_10, %c0_11, %c0_12] : memref<5x1x128xf32, #tpu.memory_space<vmem>>, vector<1x1x128xf32>
    %13 = vector.shape_cast %12 : vector<1x1x128xf32> to vector<1x128xf32>
    %14 = vector.broadcast %13 : vector<1x128xf32> to vector<8x128xf32>
    %15 = arith.addf %11, %14 : vector<8x128xf32>
    %cst_13 = arith.constant 0.000000e+00 : f32
    %16 = vector.broadcast %cst_13 : f32 to vector<8x128xf32>
    %17 = arith.maximumf %15, %16 : vector<8x128xf32>
    %18 = arith.truncf %17 : vector<8x128xf32> to vector<8x128xbf16>
    %c1 = arith.constant 1 : index
    %c0_14 = arith.constant 0 : index
    %c0_15 = arith.constant 0 : index
    %19 = vector.load %arg4[%c1, %c0_14, %c0_15] : memref<5x128x128xbf16, #tpu.memory_space<vmem>>, vector<1x128x128xbf16>
    %20 = vector.shape_cast %19 : vector<1x128x128xbf16> to vector<128x128xbf16>
    %cst_16 = arith.constant dense<0.000000e+00> : vector<8x128xf32>
    %21 = tpu.matmul %18, %20, %cst_16 {dimension_numbers = #tpu.dot_dimension_numbers<[1], [0], [0], [1], [0, 0, 1, 1], [], []>} : vector<8x128xbf16>, vector<128x128xbf16>, vector<8x128xf32> -> vector<8x128xf32>
    %c1_17 = arith.constant 1 : index
    %c0_18 = arith.constant 0 : index
    %c0_19 = arith.constant 0 : index
    %22 = vector.load %arg5[%c1_17, %c0_18, %c0_19] : memref<5x1x128xf32, #tpu.memory_space<vmem>>, vector<1x1x128xf32>
    %23 = vector.shape_cast %22 : vector<1x1x128xf32> to vector<1x128xf32>
    %24 = vector.broadcast %23 : vector<1x128xf32> to vector<8x128xf32>
    %25 = arith.addf %21, %24 : vector<8x128xf32>
    %cst_20 = arith.constant 0.000000e+00 : f32
    %26 = vector.broadcast %cst_20 : f32 to vector<8x128xf32>
    %27 = arith.maximumf %25, %26 : vector<8x128xf32>
    %28 = arith.truncf %27 : vector<8x128xf32> to vector<8x128xbf16>
    %c2 = arith.constant 2 : index
    %c0_21 = arith.constant 0 : index
    %c0_22 = arith.constant 0 : index
    %29 = vector.load %arg4[%c2, %c0_21, %c0_22] : memref<5x128x128xbf16, #tpu.memory_space<vmem>>, vector<1x128x128xbf16>
    %30 = vector.shape_cast %29 : vector<1x128x128xbf16> to vector<128x128xbf16>
    %cst_23 = arith.constant dense<0.000000e+00> : vector<8x128xf32>
    %31 = tpu.matmul %28, %30, %cst_23 {dimension_numbers = #tpu.dot_dimension_numbers<[1], [0], [0], [1], [0, 0, 1, 1], [], []>} : vector<8x128xbf16>, vector<128x128xbf16>, vector<8x128xf32> -> vector<8x128xf32>
    %c2_24 = arith.constant 2 : index
    %c0_25 = arith.constant 0 : index
    %c0_26 = arith.constant 0 : index
    %32 = vector.load %arg5[%c2_24, %c0_25, %c0_26] : memref<5x1x128xf32, #tpu.memory_space<vmem>>, vector<1x1x128xf32>
    %33 = vector.shape_cast %32 : vector<1x1x128xf32> to vector<1x128xf32>
    %34 = vector.broadcast %33 : vector<1x128xf32> to vector<8x128xf32>
    %35 = arith.addf %31, %34 : vector<8x128xf32>
    %cst_27 = arith.constant 0.000000e+00 : f32
    %36 = vector.broadcast %cst_27 : f32 to vector<8x128xf32>
    %37 = arith.maximumf %35, %36 : vector<8x128xf32>
    %38 = arith.truncf %37 : vector<8x128xf32> to vector<8x128xbf16>
    %c3 = arith.constant 3 : index
    %c0_28 = arith.constant 0 : index
    %c0_29 = arith.constant 0 : index
    %39 = vector.load %arg4[%c3, %c0_28, %c0_29] : memref<5x128x128xbf16, #tpu.memory_space<vmem>>, vector<1x128x128xbf16>
    %40 = vector.shape_cast %39 : vector<1x128x128xbf16> to vector<128x128xbf16>
    %cst_30 = arith.constant dense<0.000000e+00> : vector<8x128xf32>
    %41 = tpu.matmul %38, %40, %cst_30 {dimension_numbers = #tpu.dot_dimension_numbers<[1], [0], [0], [1], [0, 0, 1, 1], [], []>} : vector<8x128xbf16>, vector<128x128xbf16>, vector<8x128xf32> -> vector<8x128xf32>
    %c3_31 = arith.constant 3 : index
    %c0_32 = arith.constant 0 : index
    %c0_33 = arith.constant 0 : index
    %42 = vector.load %arg5[%c3_31, %c0_32, %c0_33] : memref<5x1x128xf32, #tpu.memory_space<vmem>>, vector<1x1x128xf32>
    %43 = vector.shape_cast %42 : vector<1x1x128xf32> to vector<1x128xf32>
    %44 = vector.broadcast %43 : vector<1x128xf32> to vector<8x128xf32>
    %45 = arith.addf %41, %44 : vector<8x128xf32>
    %cst_34 = arith.constant 0.000000e+00 : f32
    %46 = vector.broadcast %cst_34 : f32 to vector<8x128xf32>
    %47 = arith.maximumf %45, %46 : vector<8x128xf32>
    %48 = arith.truncf %47 : vector<8x128xf32> to vector<8x128xbf16>
    %c4 = arith.constant 4 : index
    %c0_35 = arith.constant 0 : index
    %c0_36 = arith.constant 0 : index
    %49 = vector.load %arg4[%c4, %c0_35, %c0_36] : memref<5x128x128xbf16, #tpu.memory_space<vmem>>, vector<1x128x128xbf16>
    %50 = vector.shape_cast %49 : vector<1x128x128xbf16> to vector<128x128xbf16>
    %cst_37 = arith.constant dense<0.000000e+00> : vector<8x128xf32>
    %51 = tpu.matmul %48, %50, %cst_37 {dimension_numbers = #tpu.dot_dimension_numbers<[1], [0], [0], [1], [0, 0, 1, 1], [], []>} : vector<8x128xbf16>, vector<128x128xbf16>, vector<8x128xf32> -> vector<8x128xf32>
    %c4_38 = arith.constant 4 : index
    %c0_39 = arith.constant 0 : index
    %c0_40 = arith.constant 0 : index
    %52 = vector.load %arg5[%c4_38, %c0_39, %c0_40] : memref<5x1x128xf32, #tpu.memory_space<vmem>>, vector<1x1x128xf32>
    %53 = vector.shape_cast %52 : vector<1x1x128xf32> to vector<1x128xf32>
    %54 = vector.broadcast %53 : vector<1x128xf32> to vector<8x128xf32>
    %55 = arith.addf %51, %54 : vector<8x128xf32>
    %cst_41 = arith.constant 0.000000e+00 : f32
    %56 = vector.broadcast %cst_41 : f32 to vector<8x128xf32>
    %57 = arith.maximumf %55, %56 : vector<8x128xf32>
    %58 = tpu.iota {dimensions = array<i32: 1>} : vector<8x128xi32>
    %c10_i32 = arith.constant 10 : i32
    %59 = vector.broadcast %c10_i32 : i32 to vector<8x128xi32>
    %60 = arith.cmpi slt, %58, %59 : vector<8x128xi32>
    %cst_42 = arith.constant -1.000000e+30 : f32
    %61 = vector.broadcast %cst_42 : f32 to vector<8x128xf32>
    %62 = arith.select %60, %57, %61 : vector<8x128xi1>, vector<8x128xf32>
    %cst_43 = arith.constant dense<0xFF800000> : vector<8xf32>
    %63 = vector.multi_reduction <maximumf>, %62, %cst_43 [1] : vector<8x128xf32> to vector<8xf32>
    %64 = vector.shape_cast %63 : vector<8xf32> to vector<8x1xf32>
    %65 = vector.broadcast %64 : vector<8x1xf32> to vector<8x128xf32>
    %66 = arith.subf %62, %65 : vector<8x128xf32>
    %67 = math.exp %66 : vector<8x128xf32>
    %cst_44 = arith.constant dense<0.000000e+00> : vector<8xf32>
    %68 = vector.multi_reduction <add>, %67, %cst_44 [1] : vector<8x128xf32> to vector<8xf32>
    %69 = vector.shape_cast %68 : vector<8xf32> to vector<8x1xf32>
    %70 = vector.broadcast %69 : vector<8x1xf32> to vector<8x128xf32>
    %71 = arith.divf %67, %70 : vector<8x128xf32>
    %c0_45 = arith.constant 0 : index
    %c0_46 = arith.constant 0 : index
    %72 = vector.load %arg6[%c0_45, %c0_46] : memref<8x128xf32, #tpu.memory_space<vmem>>, vector<8x128xf32>
    tpu.vector_store %arg6[%c0_45, %c0_46], %71 {strides = array<i32>} : memref<8x128xf32, #tpu.memory_space<vmem>>, vector<8x128xf32>,
    return
  }
  func.func @transform_0(%arg0: i32) -> (i32, i32) {
    %c0_i32 = arith.constant 0 : i32
    %c0_i32_0 = arith.constant 0 : i32
    return %arg0, %c0_i32 : i32, i32
  }
  func.func @transform_1(%arg0: i32) -> (i32, i32) {
    %c0_i32 = arith.constant 0 : i32
    %c0_i32_0 = arith.constant 0 : i32
    %c0_i32_1 = arith.constant 0 : i32
    return %c0_i32, %c0_i32_0 : i32, i32
  }
  func.func @transform_2(%arg0: i32) -> (i32, i32) {
    %c0_i32 = arith.constant 0 : i32
    %c0_i32_0 = arith.constant 0 : i32
    %c0_i32_1 = arith.constant 0 : i32
    return %c0_i32, %c0_i32_0 : i32, i32
  }
  func.func @transform_3(%arg0: i32) -> (i32, i32, i32) {
    %c0_i32 = arith.constant 0 : i32
    %c0_i32_0 = arith.constant 0 : i32
    %c0_i32_1 = arith.constant 0 : i32
    %c0_i32_2 = arith.constant 0 : i32
    return %c0_i32, %c0_i32_0, %c0_i32_1 : i32, i32, i32
  }
  func.func @transform_4(%arg0: i32) -> (i32, i32, i32) {
    %c0_i32 = arith.constant 0 : i32
    %c0_i32_0 = arith.constant 0 : i32
    %c0_i32_1 = arith.constant 0 : i32
    %c0_i32_2 = arith.constant 0 : i32
    return %c0_i32, %c0_i32_0, %c0_i32_1 : i32, i32, i32
  }
  func.func @transform_5(%arg0: i32) -> (i32, i32) {
    %c0_i32 = arith.constant 0 : i32
    %c0_i32_0 = arith.constant 0 : i32
    return %arg0, %c0_i32 : i32, i32
  }
}

</mosaic_0001>

<bundles_post_ra>
// kernel: forward.1
= control target key start
LH: loop header
LB: loop body
LE: loop exit
PB: predicated region body
PF: predicated region fallthrough
CT: control target
= control target key end

     0   :  { %10 = vsyncpa [#allocation3], 0  ;;  %s1250_s0 = inlined_call_operand.vmem [shape: bf16[8,128], index: 0, kind: input, shape index: {}]   ;;  %s1251_s1 = inlined_call_operand.hbm [shape: bf16[128,128], index: 1, kind: input, shape index: {}]   ;;  %s1252_s2 = inlined_call_operand.vmem [shape: f32[1,128], index: 2, kind: input, shape index: {}]   ;;  %s1253_s3 = inlined_call_operand.hbm [shape: bf16[5,128,128], index: 3, kind: input, shape index: {}]   ;;  %s1254_s4 = inlined_call_operand.vmem [shape: f32[5,1,128], index: 4, kind: input, shape index: {}]   ;;  %s1255_s5 = inlined_call_operand.hbm [shape: f32[8,128], index: 5, kind: output, shape index: {}]  }
   0x1   :  { %11 = vsyncpa [#allocation6], 0 }
   0x2   :  { %12 = vsyncpa [#allocation4], 0  ;;  %s1123_s18 = smov [#allocation2]  }
   0x3   :  { %s20_s19 = sshll.u32 %s1123_s18, 4  ;;  %s21_s19 = int_to_ptr.vmem [resolvable:$true] %s20_s19 }
   0x4   :  { %s1065_s20 = scalar_lea.vmem %s21_s19, 1024  ;;  %p1070_p1 = scmp.lt.s32.totalorder %s21_s19, %s21_s19 }
   0x5   :  { %p1066_p0 = scmp.ne.s32.totalorder %s21_s19, %s1065_s20  ;;  %p1071_p2 = scmp.lt.s32.totalorder %s1065_s20, %s1065_s20 }
   0x7   :  { %p1072_p3 = por %p1071_p2, %p1070_p1 }
   0x9   :  { %p1073_p4 = pnand %p1072_p3, %p1066_p0 }
   0xb   :  { %1076 = shalt.err (!%p1073_p4)
}
   0xc   :  { %s1124_s21 = smov 64   ;;  %s1125_s22 = smov 4  }
   0xd   :  { %26 = dma.hbm_to_vmem [thread:$0]  %s1251_s1, 1024, %s21_s19, [#allocation3], %s1124_s21, %s1124_s21, %s1125_s22  }
   0xe   :  { %s1126_s25 = smov [#allocation5]  }
   0xf   :  { %s34_s26 = sshll.u32 %s1126_s25, 4  ;;  %s35_s26 = int_to_ptr.vmem [resolvable:$true] %s34_s26 }
  0x10   :  { %s1085_s27 = scalar_lea.vmem %s35_s26, 5120  ;;  %p1090_p6 = scmp.lt.s32.totalorder %s35_s26, %s35_s26 }
  0x11   :  { %p1086_p5 = scmp.ne.s32.totalorder %s35_s26, %s1085_s27  ;;  %p1091_p7 = scmp.lt.s32.totalorder %s1085_s27, %s1085_s27 }
  0x13   :  { %p1092_p8 = por %p1091_p7, %p1090_p6 }
  0x15   :  { %p1093_p9 = pnand %p1092_p8, %p1086_p5 }
  0x17   :  { %1096 = shalt.err (!%p1093_p9)
}
  0x18   :  { %40 = dma.hbm_to_vmem [thread:$0]  %s1253_s3, 5120, %s35_s26, [#allocation6], %s1124_s21, %s1124_s21, %s1125_s22  }
  0x19   :  { %1117 = dma.done.wait [#allocation3], 1024  }
  0x1a   :  { %1118 = vsyncadd [#allocation3], 4294966272 }
  0x1b   :  { %1119 = dma.done.wait [#allocation6], 5120  }
  0x1c   :  { %1120 = vsyncadd [#allocation6], 4294962176  ;;  %v1127_v0 = vmov 0.0   ;;  %vm1128_vm0 = vmmov 0   ;;  %v1005_v1 = vld [vmem:[#allocation2 + $0x38] sm:$0xff]   ;;  %v1006_v2 = vld [vmem:[#allocation2 + $0x30] sm:$0xff]  }
  0x1d   :  { %878 = vmatprep.subr.bf16.mxu0 %v1127_v0  ;;  %894 = vmatprep.mubr.msk.bf16.mxu0 %vm1128_vm0, %v1127_v0  ;;  %v1007_v3 = vld [vmem:[#allocation2 + $0x28] sm:$0xff]   ;;  %v1013_v4 = vld [vmem:[#allocation5 + $0x38] sm:$0xff]   ;;  %v1008_v5 = vld [vmem:[#allocation2 + $0x20] sm:$0xff]   ;;  %s1129_s15 = smov [#allocation7]  }
  0x1e   :  { %898 = vmatprep.subr.bf16.mxu1 %v1127_v0  ;;  %914 = vmatprep.mubr.msk.bf16.mxu1 %vm1128_vm0, %v1127_v0  ;;  %v1014_v6 = vld [vmem:[#allocation5 + $0x30] sm:$0xff]   ;;  %v1009_v7 = vld [vmem:[#allocation2 + $0x18] sm:$0xff]   ;;  %v1015_v8 = vld [vmem:[#allocation5 + $0x28] sm:$0xff]  }
  0x1f   :  { %879 = vmatpush3.bf16.msra.mxu0 %v1005_v1  ;;  %899 = vmatpush3.bf16.msra.mxu1 %v1013_v4  ;;  %v1010_v9 = vld [vmem:[#allocation2 + $0x10] sm:$0xff]   ;;  %v1016_v10 = vld [vmem:[#allocation5 + $0x20] sm:$0xff]   ;;  %v1011_v11 = vld [vmem:[#allocation2 + $0x8] sm:$0xff]  }
  0x20   :  { %880 = vmatprep.subr.bf16.mxu0 %v1127_v0  ;;  %900 = vmatprep.subr.bf16.mxu1 %v1127_v0  ;;  %v1017_v12 = vld [vmem:[#allocation5 + $0x18] sm:$0xff]   ;;  %v1012_v13 = vld [vmem:[#allocation2] sm:$0xff]   ;;  %v1018_v14 = vld [vmem:[#allocation5 + $0x10] sm:$0xff]  }
  0x21   :  { %v50_v15 = vld [vmem:[%s1250_s0] sm:$0xf]  ;;  %v1019_v16 = vld [vmem:[#allocation5 + $0x8] sm:$0xff]   ;;  %v1021_v18 = vld [vmem:[#allocation5 + $0x78] sm:$0xff]  }
  0x22   :  { %v1020_v17 = vld [vmem:[#allocation5] sm:$0xff]   ;;  %v1022_v19 = vld [vmem:[#allocation5 + $0x70] sm:$0xff]   ;;  %v1023_v20 = vld [vmem:[#allocation5 + $0x68] sm:$0xff]  }
  0x23   :  { %881 = vmatpush3.bf16.msra.mxu0 %v1006_v2  ;;  %901 = vmatpush3.bf16.msra.mxu1 %v1014_v6  ;;  %v1024_v21 = vld [vmem:[#allocation5 + $0x60] sm:$0xff]   ;;  %v1025_v22 = vld [vmem:[#allocation5 + $0x58] sm:$0xff]   ;;  %v1026_v23 = vld [vmem:[#allocation5 + $0x50] sm:$0xff]  }
  0x24   :  { %882 = vmatprep.subr.bf16.mxu0 %v1127_v0  ;;  %902 = vmatprep.subr.bf16.mxu1 %v1127_v0  ;;  %v766_v24 = vld [vmem:[%s1252_s2] ss:$0 sm:$0xff]  ;;  %v1027_v32 = vld [vmem:[#allocation5 + $0x48] sm:$0xff]   ;;  %v1029_v34 = vld [vmem:[#allocation5 + $0xb8] sm:$0xff]  }
  0x25   :  { %v1028_v33 = vld [vmem:[#allocation5 + $0x40] sm:$0xff]   ;;  %v1030_v35 = vld [vmem:[#allocation5 + $0xb0] sm:$0xff]   ;;  %v1031_v36 = vld [vmem:[#allocation5 + $0xa8] sm:$0xff]  }
  0x26   :  { %v1032_v37 = vld [vmem:[#allocation5 + $0xa0] sm:$0xff]   ;;  %v1033_v38 = vld [vmem:[#allocation5 + $0x98] sm:$0xff]   ;;  %v1034_v39 = vld [vmem:[#allocation5 + $0x90] sm:$0xff]  }
  0x27   :  { %883 = vmatpush3.bf16.msra.mxu0 %v1007_v3  ;;  %903 = vmatpush3.bf16.msra.mxu1 %v1015_v8  ;;  %v775_v40 = vld [vmem:[%s1254_s4] ss:$0 sm:$0xff]  ;;  %v1035_v48 = vld [vmem:[#allocation5 + $0x88] sm:$0xff]   ;;  %v1037_v50 = vld [vmem:[#allocation5 + $0xf8] sm:$0xff]  }
  0x28   :  { %884 = vmatprep.subr.bf16.mxu0 %v1127_v0  ;;  %904 = vmatprep.subr.bf16.mxu1 %v1127_v0  ;;  %v1036_v49 = vld [vmem:[#allocation5 + $0x80] sm:$0xff]   ;;  %v1038_v51 = vld [vmem:[#allocation5 + $0xf0] sm:$0xff]   ;;  %v1039_v52 = vld [vmem:[#allocation5 + $0xe8] sm:$0xff]  }
  0x29   :  { %v1040_v53 = vld [vmem:[#allocation5 + $0xe0] sm:$0xff]   ;;  %v1041_v54 = vld [vmem:[#allocation5 + $0xd8] sm:$0xff]   ;;  %v1042_v55 = vld [vmem:[#allocation5 + $0xd0] sm:$0xff]  }
  0x2a   :  { %v785_v56 = vld [vmem:[%s1254_s4 + $0x1] ss:$0 sm:$0xff]  ;;  %v1043_v1 = vld [vmem:[#allocation5 + $0xc8] sm:$0xff]   ;;  %v1045_v3 = vld [vmem:[#allocation5 + $0x138] sm:$0xff]  }
  0x2b   :  { %885 = vmatpush3.bf16.msra.mxu0 %v1008_v5  ;;  %905 = vmatpush3.bf16.msra.mxu1 %v1016_v10  ;;  %v1044_v2 = vld [vmem:[#allocation5 + $0xc0] sm:$0xff]   ;;  %v1046_v4 = vld [vmem:[#allocation5 + $0x130] sm:$0xff]   ;;  %v1047_v5 = vld [vmem:[#allocation5 + $0x128] sm:$0xff]  }
  0x2c   :  { %886 = vmatprep.subr.bf16.mxu0 %v1127_v0  ;;  %906 = vmatprep.subr.bf16.mxu1 %v1127_v0  ;;  %v1048_v6 = vld [vmem:[#allocation5 + $0x120] sm:$0xff]   ;;  %v1050_v8 = vld [vmem:[#allocation5 + $0x110] sm:$0xff]  }
  0x2f   :  { %887 = vmatpush3.bf16.msra.mxu0 %v1009_v7  ;;  %907 = vmatpush3.bf16.msra.mxu1 %v1017_v12  ;;  %v1049_v7 = vld [vmem:[#allocation5 + $0x118] sm:$0xff]  }
  0x30   :  { %888 = vmatprep.subr.bf16.mxu0 %v1127_v0  ;;  %908 = vmatprep.subr.bf16.mxu1 %v1127_v0 }
  0x33   :  { %889 = vmatpush3.bf16.msra.mxu0 %v1010_v9  ;;  %909 = vmatpush3.bf16.msra.mxu1 %v1018_v14  ;;  %v795_v9 = vld [vmem:[%s1254_s4 + $0x2] ss:$0 sm:$0xff] }
  0x34   :  { %890 = vmatprep.subr.bf16.mxu0 %v1127_v0  ;;  %910 = vmatprep.subr.bf16.mxu1 %v1127_v0 }
  0x37   :  { %891 = vmatpush3.bf16.msra.mxu0 %v1011_v11  ;;  %911 = vmatpush3.bf16.msra.mxu1 %v1019_v16 }
  0x38   :  { %892 = vmatprep.subr.bf16.mxu0 %v1127_v0  ;;  %912 = vmatprep.subr.bf16.mxu1 %v1127_v0 }
  0x3b   :  { %893 = vmatpush3.bf16.msra.mxu0 %v1012_v13  ;;  %913 = vmatpush3.bf16.msra.mxu1 %v1020_v17  ;;  %v1051_v17 = vld [vmem:[#allocation5 + $0x108] sm:$0xff]  }
  0x3c   :  { %918 = vmatprep.subr.bf16.mxu0 %v1127_v0  ;;  %938 = vmatprep.subr.bf16.mxu1 %v1127_v0 }
  0x3e   :  { %895 = vmatmul.mubr.bf16.vlgmr.msra.gmra.mxu0 %v50_v15 }
  0x3f   :  { %934 = vmatprep.mubr.msk.bf16.mxu0 %vm1128_vm0, %v1127_v0  ;;  %919 = vmatpush3.bf16.msra.mxu0 %v1021_v18  ;;  %v1052_v18 = vld [vmem:[#allocation5 + $0x100] sm:$0xff]  }
  0x40   :  { %920 = vmatprep.subr.bf16.mxu0 %v1127_v0 }
  0x43   :  { %921 = vmatpush3.bf16.msra.mxu0 %v1022_v19  ;;  %v805_v19 = vld [vmem:[%s1254_s4 + $0x3] ss:$0 sm:$0xff] }
  0x44   :  { %922 = vmatprep.subr.bf16.mxu0 %v1127_v0 }
  0x47   :  { %923 = vmatpush3.bf16.msra.mxu0 %v1023_v20 }
  0x48   :  { %924 = vmatprep.subr.bf16.mxu0 %v1127_v0 }
  0x4b   :  { %925 = vmatpush3.bf16.msra.mxu0 %v1024_v21 }
  0x4c   :  { %926 = vmatprep.subr.bf16.mxu0 %v1127_v0 }
  0x4f   :  { %927 = vmatpush3.bf16.msra.mxu0 %v1025_v22 }
  0x50   :  { %928 = vmatprep.subr.bf16.mxu0 %v1127_v0 }
  0x53   :  { %929 = vmatpush3.bf16.msra.mxu0 %v1026_v23 }
  0x54   :  { %930 = vmatprep.subr.bf16.mxu0 %v1127_v0 }
  0x57   :  { %931 = vmatpush3.bf16.msra.mxu0 %v1027_v32 }
  0x58   :  { %932 = vmatprep.subr.bf16.mxu0 %v1127_v0 }
  0x5b   :  { %933 = vmatpush3.bf16.msra.mxu0 %v1028_v33 }
  0x5c   :  { %958 = vmatprep.subr.bf16.mxu0 %v1127_v0 }
  0xfe   :  { %v156_v25 = vpop.f32.mrf.mxu0 }
  0xff   :  { %v157_v26 = vadd.f32 %v766_v24, %v156_v25 }
 0x100   :  { %v896_v27 = vpop.f32.mrf.mxu0 }
 0x101   :  { %v162_v28 = vmax.f32 %v157_v26, 0.0  ;;  %v736_v27 = vlaneseq }
 0x102   :  { %v159_v29 = vpop.f32.mrf.mxu0 }
 0x103   :  { %v163_v30 = vpack.c.bf16 %v162_v28, %v162_v28  ;;  %v815_v28 = vld [vmem:[%s1254_s4 + $0x4] ss:$0 sm:$0xff]  ;;  %s756_s4 = sshll.u32 %s1129_s15, 4  ;;  %s757_s4 = int_to_ptr.vmem [resolvable:$true] %s756_s4 }
 0x104   :  { %v897_v31 = vpop.f32.mrf.mxu0  ;;  %s1097_s16 = scalar_lea.vmem %s757_s4, 128  ;;  %p1102_p11 = scmp.lt.s32.totalorder %s757_s4, %s757_s4 }
 0x105   :  { %915 = vmatmul.mubr.bf16.vlgmr.msra.gmra.mxu1 %v163_v30  ;;  %p1098_p10 = scmp.ne.s32.totalorder %s757_s4, %s1097_s16  ;;  %p1103_p12 = scmp.lt.s32.totalorder %s1097_s16, %s1097_s16 }
 0x106   :  { %954 = vmatprep.mubr.msk.bf16.mxu1 %vm1128_vm0, %v1127_v0  ;;  %939 = vmatpush3.bf16.msra.mxu1 %v1029_v34 }
 0x107   :  { %940 = vmatprep.subr.bf16.mxu1 %v1127_v0  ;;  %p1104_p13 = por %p1103_p12, %p1102_p11 }
 0x109   :  { %p1105_p0 = pnand %p1104_p13, %p1098_p10 }
 0x10a   :  { %941 = vmatpush3.bf16.msra.mxu1 %v1030_v35 }
 0x10b   :  { %942 = vmatprep.subr.bf16.mxu1 %v1127_v0 }
 0x10e   :  { %943 = vmatpush3.bf16.msra.mxu1 %v1031_v36 }
 0x10f   :  { %944 = vmatprep.subr.bf16.mxu1 %v1127_v0 }
 0x112   :  { %945 = vmatpush3.bf16.msra.mxu1 %v1032_v37 }
 0x113   :  { %946 = vmatprep.subr.bf16.mxu1 %v1127_v0 }
 0x116   :  { %947 = vmatpush3.bf16.msra.mxu1 %v1033_v38 }
 0x117   :  { %948 = vmatprep.subr.bf16.mxu1 %v1127_v0 }
 0x11a   :  { %949 = vmatpush3.bf16.msra.mxu1 %v1034_v39 }
 0x11b   :  { %950 = vmatprep.subr.bf16.mxu1 %v1127_v0 }
 0x11e   :  { %951 = vmatpush3.bf16.msra.mxu1 %v1035_v48 }
 0x11f   :  { %952 = vmatprep.subr.bf16.mxu1 %v1127_v0 }
 0x122   :  { %953 = vmatpush3.bf16.msra.mxu1 %v1036_v49 }
 0x123   :  { %978 = vmatprep.subr.bf16.mxu1 %v1127_v0 }
 0x1c5   :  { %v269_v41 = vpop.f32.mrf.mxu1 }
 0x1c6   :  { %v270_v42 = vadd.f32 %v775_v40, %v269_v41 }
 0x1c7   :  { %v916_v43 = vpop.f32.mrf.mxu1 }
 0x1c8   :  { %v275_v44 = vmax.f32 %v270_v42, 0.0 }
 0x1c9   :  { %v272_v45 = vpop.f32.mrf.mxu1 }
 0x1ca   :  { %v276_v46 = vpack.c.bf16 %v275_v44, %v275_v44 }
 0x1cb   :  { %v917_v47 = vpop.f32.mrf.mxu1 }
 0x1cc   :  { %935 = vmatmul.mubr.bf16.vlgmr.msra.gmra.mxu0 %v276_v46 }
 0x1cd   :  { %974 = vmatprep.mubr.msk.bf16.mxu0 %vm1128_vm0, %v1127_v0  ;;  %959 = vmatpush3.bf16.msra.mxu0 %v1037_v50 }
 0x1ce   :  { %960 = vmatprep.subr.bf16.mxu0 %v1127_v0 }
 0x1d1   :  { %961 = vmatpush3.bf16.msra.mxu0 %v1038_v51 }
 0x1d2   :  { %962 = vmatprep.subr.bf16.mxu0 %v1127_v0 }
 0x1d5   :  { %963 = vmatpush3.bf16.msra.mxu0 %v1039_v52 }
 0x1d6   :  { %964 = vmatprep.subr.bf16.mxu0 %v1127_v0 }
 0x1d9   :  { %965 = vmatpush3.bf16.msra.mxu0 %v1040_v53 }
 0x1da   :  { %966 = vmatprep.subr.bf16.mxu0 %v1127_v0 }
 0x1dd   :  { %967 = vmatpush3.bf16.msra.mxu0 %v1041_v54 }
 0x1de   :  { %968 = vmatprep.subr.bf16.mxu0 %v1127_v0 }
 0x1e1   :  { %969 = vmatpush3.bf16.msra.mxu0 %v1042_v55 }
 0x1e2   :  { %970 = vmatprep.subr.bf16.mxu0 %v1127_v0 }
 0x1e5   :  { %971 = vmatpush3.bf16.msra.mxu0 %v1043_v1 }
 0x1e6   :  { %972 = vmatprep.subr.bf16.mxu0 %v1127_v0 }
 0x1e9   :  { %973 = vmatpush3.bf16.msra.mxu0 %v1044_v2 }
 0x28c   :  { %v384_v57 = vpop.f32.mrf.mxu0 }
 0x28d   :  { %v385_v58 = vadd.f32 %v785_v56, %v384_v57 }
 0x28e   :  { %v936_v59 = vpop.f32.mrf.mxu0 }
 0x28f   :  { %v390_v60 = vmax.f32 %v385_v58, 0.0 }
 0x290   :  { %v387_v61 = vpop.f32.mrf.mxu0 }
 0x291   :  { %v391_v62 = vpack.c.bf16 %v390_v60, %v390_v60 }
 0x292   :  { %v937_v63 = vpop.f32.mrf.mxu0 }
 0x293   :  { %955 = vmatmul.mubr.bf16.vlgmr.msra.gmra.mxu1 %v391_v62 }
 0x294   :  { %994 = vmatprep.mubr.msk.bf16.mxu1 %vm1128_vm0, %v1127_v0  ;;  %979 = vmatpush3.bf16.msra.mxu1 %v1045_v3 }
 0x295   :  { %980 = vmatprep.subr.bf16.mxu1 %v1127_v0 }
 0x298   :  { %981 = vmatpush3.bf16.msra.mxu1 %v1046_v4 }
 0x299   :  { %982 = vmatprep.subr.bf16.mxu1 %v1127_v0 }
 0x29c   :  { %983 = vmatpush3.bf16.msra.mxu1 %v1047_v5 }
 0x29d   :  { %984 = vmatprep.subr.bf16.mxu1 %v1127_v0 }
 0x2a0   :  { %985 = vmatpush3.bf16.msra.mxu1 %v1048_v6 }
 0x2a1   :  { %986 = vmatprep.subr.bf16.mxu1 %v1127_v0 }
 0x2a4   :  { %987 = vmatpush3.bf16.msra.mxu1 %v1049_v7 }
 0x2a5   :  { %988 = vmatprep.subr.bf16.mxu1 %v1127_v0 }
 0x2a8   :  { %989 = vmatpush3.bf16.msra.mxu1 %v1050_v8 }
 0x2a9   :  { %990 = vmatprep.subr.bf16.mxu1 %v1127_v0 }
 0x2ac   :  { %991 = vmatpush3.bf16.msra.mxu1 %v1051_v17 }
 0x2ad   :  { %992 = vmatprep.subr.bf16.mxu1 %v1127_v0  ;;  %v737_v0 = vand.u32 127, %v736_v27 }
 0x2af   :  { %vm738_vm1 = vcmp.lt.s32.totalorder %v737_v0, 10 }
 0x2b0   :  { %993 = vmatpush3.bf16.msra.mxu1 %v1052_v18 }
 0x353   :  { %v499_v10 = vpop.f32.mrf.mxu1 }
 0x354   :  { %v500_v11 = vadd.f32 %v795_v9, %v499_v10 }
 0x355   :  { %v956_v12 = vpop.f32.mrf.mxu1 }
 0x356   :  { %v505_v13 = vmax.f32 %v500_v11, 0.0 }
 0x357   :  { %v502_v14 = vpop.f32.mrf.mxu1 }
 0x358   :  { %v506_v15 = vpack.c.bf16 %v505_v13, %v505_v13 }
 0x359   :  { %v957_v16 = vpop.f32.mrf.mxu1 }
 0x35a   :  { %975 = vmatmul.mubr.bf16.vlgmr.msra.gmra.mxu0 %v506_v15 }
 0x41a   :  { %v614_v20 = vpop.f32.mrf.mxu0 }
 0x41b   :  { %v615_v21 = vadd.f32 %v805_v19, %v614_v20 }
 0x41c   :  { %v976_v22 = vpop.f32.mrf.mxu0 }
 0x41d   :  { %v620_v23 = vmax.f32 %v615_v21, 0.0 }
 0x41e   :  { %v617_v24 = vpop.f32.mrf.mxu0 }
 0x41f   :  { %v621_v25 = vpack.c.bf16 %v620_v23, %v620_v23 }
 0x420   :  { %v977_v26 = vpop.f32.mrf.mxu0 }
 0x421   :  { %995 = vmatmul.mubr.bf16.vlgmr.msra.gmra.mxu1 %v621_v25 }
 0x4e1   :  { %v729_v29 = vpop.f32.mrf.mxu1 }
 0x4e2   :  { %v730_v30 = vadd.f32 %v815_v28, %v729_v29 }
 0x4e3   :  { %v996_v31 = vpop.f32.mrf.mxu1 }
 0x4e4   :  { %v735_v32 = vmax.f32 %v730_v30, 0.0 }
 0x4e5   :  { %v732_v33 = vpop.f32.mrf.mxu1 }
 0x4e6   :  { %v739_v34 = vsel %vm738_vm1, %v735_v32, -1e+30 }
 0x4e7   :  { %740 = vmax.xlane.f32.xlu0 %v739_v34  ;;  %v997_v35 = vpop.f32.mrf.mxu1 }
 0x570   :  { %v741_v36 = vpop.xlane.xlu0 %740 }
 0x571   :  { %v742_v37 = vsub.f32 %v739_v34, %v741_v36 }
 0x573   :  { %v743_v38 = vmul.f32 1.442695, %v742_v37 }
 0x575   :  { %1053 = vpow2.f32 %v743_v38 }
 0x582   :  { %v1054_v39 = vpop.eup %1053 }
 0x583   :  { %745 = vadd.xlane.f32.xlu0 %v1054_v39 }
 0x60c   :  { %v746_v40 = vpop.xlane.xlu0 %745 }
 0x60d   :  { %1055 = vrcp.f32 %v746_v40 }
 0x61a   :  { %v1056_v41 = vpop.eup %1055 }
 0x61b   :  { %v748_v42 = vmul.f32 %v1056_v41, %v1054_v39 }
 0x61d   :  { %749 = vst [vmem:[#allocation7] sm:$0xff] %v748_v42 }
 0x61e   :  { %1108 = shalt.err (!%p1105_p0)
}
 0x61f   :  { %759 = dma.vmem_to_hbm [thread:$0]  %s757_s4, 128, %s1255_s5, [#allocation4]  }
 0x620   :  { %1121 = dma.done.wait [#allocation4], 128  }
 0x621   :  { %1122 = vsyncadd [#allocation4], 4294967168 }
 0x622   :  { %763 = vsyncpa [#allocation3], 1 }
 0x623   :  { %764 = vsyncpa [#allocation6], 1 }
 0x624   :  { %765 = vsyncpa [#allocation4], 1 }

</bundles_post_ra>
